<compile_context>
chip_gen: v6e
topology: v6e:2x2x1
jax: 0.10.0
libtpu: 0.0.40
codegen_flags: <defaults>
</compile_context>

<pallas_src>
import numpy as np
import jax
import jax.numpy as jnp
from jax.experimental import pallas as pl
from jax.experimental.pallas import tpu as pltpu

NUM_COCO_IDS = 91     # positive_map rows (COCO category-id indexed)
MAX_TEXT_LEN = 256    # positive_map cols / text-token dimension
LABEL_PAD = 128       # lane-dense padded label axis (91 -> 128)
ROW_BLOCK = 512       # M-tile for the production-size (grid) path

# The 80 COCO category ids used by id_map in the reference module.
COCO_IDS = [
    1, 2, 3, 4, 5, 6, 7, 8, 9, 10, 11, 13, 14, 15, 16, 17, 18, 19, 20, 21,
    22, 23, 24, 25, 27, 28, 31, 32, 33, 34, 35, 36, 37, 38, 39, 40, 41, 42,
    43, 44, 46, 47, 48, 49, 50, 51, 52, 53, 54, 55, 56, 57, 58, 59, 60, 61,
    62, 63, 64, 65, 67, 70, 72, 73, 74, 75, 76, 77, 78, 79, 80, 81, 82, 84,
    85, 86, 87, 88, 89, 90,
]


def build_positive_map_padded():
    """Synthetic stand-in for the tokenizer-derived positive_map.

    Returns:
      positive_map      : f32 [91, 256]  (reference layout, like the torch module)
      pos_map_t_padded  : bf16 [256, 128] transposed + zero-padded kernel operand,
                          precomputed once (hoisted out of the per-call path).
    """
    pm = np.zeros((NUM_COCO_IDS, MAX_TEXT_LEN), dtype=np.float32)
    tok = 1
    for i, cid in enumerate(COCO_IDS):
        span = 1 + (i % 3)                # 1..3 "tokens" per category name
        pm[cid, tok:tok + span] = 1.0
        tok += span + 1                   # +1 mimics the " ." separator
    pm = pm / (pm.sum(-1, keepdims=True) + 1e-6)

    pm_t_pad = np.zeros((MAX_TEXT_LEN, LABEL_PAD), dtype=np.float32)
    pm_t_pad[:, :NUM_COCO_IDS] = pm.T
    return jnp.asarray(pm), jnp.asarray(pm_t_pad, dtype=jnp.bfloat16)


# ----------------------------- Pallas kernel ------------------------------- #

def _prob_kernel(logits_ref, posmap_ref, prob_ref):
    # sigmoid in f32 on the VPU/EUP; bf16 operands into the MXU; f32 accumulation.
    p = jax.nn.sigmoid(logits_ref[...].astype(jnp.float32)).astype(jnp.bfloat16)
    acc = jnp.dot(p, posmap_ref[...], preferred_element_type=jnp.float32)
    # Fold the label-padding mask into the store: padded cols (>= 91) become -1
    # so the wrapper's flattened top_k can never select them.  Relies on all real
    # probabilities being >= 0 (sigmoid x non-negative positive_map).
    col = jax.lax.broadcasted_iota(jnp.int32, acc.shape, 1)
    prob_ref[...] = jnp.where(col < NUM_COCO_IDS, acc, jnp.float32(-1.0))


def _cost_estimate(m, t, lp, in_itemsize):
    return pl.CostEstimate(
        flops=2 * m * t * lp,
        transcendentals=m * t,                       # sigmoid per logit
        bytes_accessed=m * t * in_itemsize + t * lp * 2 + m * lp * 4)


def prob_hot_path(logits_2d, pos_map_t_padded, row_block=ROW_BLOCK):
    """prob = sigmoid(logits) @ posmap_padded (with padded cols set to -1)."""
    M, T = logits_2d.shape
    T2, LP = pos_map_t_padded.shape
    assert T == T2 and LP == LABEL_PAD
    in_item = logits_2d.dtype.itemsize

    if M <= row_block:
        # Single whole-array invocation: no grid, no double-buffering.
        # VMEM: input + f32 upcast + bf16 MXU operand, posmap, f32 acc + output.
        vmem_bytes = M * T * (in_item + 4 + 2) + T * LP * 2 + 2 * M * LP * 4
        assert vmem_bytes < 16 * 1024 * 1024, f"unexpected VMEM use: {vmem_bytes}"
        return pl.pallas_call(
            _prob_kernel,
            out_shape=jax.ShapeDtypeStruct((M, LP), jnp.float32),
            in_specs=[pl.BlockSpec(memory_space=pltpu.MemorySpace.VMEM),
                      pl.BlockSpec(memory_space=pltpu.MemorySpace.VMEM)],
            out_specs=pl.BlockSpec(memory_space=pltpu.MemorySpace.VMEM),
            cost_estimate=_cost_estimate(M, T, LP, in_item),
        )(logits_2d, pos_map_t_padded)

    # Production sizes: tile the row axis so DMA overlaps compute and a parallel
    # grid axis can be sharded across v7x's two TensorCores.
    m_pad = row_block * pl.cdiv(M, row_block)
    x = logits_2d if m_pad == M else jnp.pad(logits_2d, ((0, m_pad - M), (0, 0)))
    # Per-step VMEM: double-buffered logits block + sigmoid temporaries,
    # double-buffered posmap block, f32 acc + double-buffered output block.
    vmem_bytes = (2 * row_block * T * in_item + row_block * T * (4 + 2)
                  + 2 * T * LP * 2 + 3 * row_block * LP * 4)
    assert vmem_bytes < 16 * 1024 * 1024, f"unexpected VMEM use: {vmem_bytes}"
    out = pl.pallas_call(
        _prob_kernel,
        grid=(m_pad // row_block,),
        in_specs=[pl.BlockSpec((row_block, T), lambda i: (i, 0)),
                  pl.BlockSpec((T, LP), lambda i: (0, 0))],
        out_specs=pl.BlockSpec((row_block, LP), lambda i: (i, 0)),
        out_shape=jax.ShapeDtypeStruct((m_pad, LP), jnp.float32),
        compiler_params=pltpu.CompilerParams(
            dimension_semantics=("parallel",)),
        cost_estimate=_cost_estimate(m_pad, T, LP, in_item),
    )(x, pos_map_t_padded)
    return out if m_pad == M else out[:M]


# ------------------------------ Forward pass -------------------------------- #

def postprocess_coco_grounding(outputs, target_sizes, pos_map_t_padded,
                               num_labels=NUM_COCO_IDS, num_select=300,
                               not_to_xyxy=False):
    out_logits = outputs["pred_logits"]        # [B, Q, T], native dtype (bf16)
    out_bbox = outputs["pred_boxes"]           # [B, Q, 4]
    B, Q, T = out_logits.shape
    LP = pos_map_t_padded.shape[1]
    L = num_labels

    assert out_logits.shape[0] == target_sizes.shape[0]
    assert target_sizes.shape[1] == 2
    assert num_select <= Q * L

    # Hot path in Pallas: sigmoid + label-projection matmul over all B*Q rows.
    # Padded label columns already hold -1 (mask folded into the kernel store).
    prob_padded = prob_hot_path(out_logits.reshape(B * Q, T), pos_map_t_padded)
    prob_padded = prob_padded.reshape(B, Q, LP)

    # torch.topk over the flattened (query, label) axis, then decode indices.
    flat = prob_padded.reshape(B, Q * LP)
    topk_values, topk_indexes = jax.lax.top_k(flat, num_select)
    scores = topk_values
    topk_boxes = topk_indexes // LP
    labels = topk_indexes % LP          # always < 91: padded columns are -1

    # Box conversion + gather + per-image scale (tiny, plain JAX; keeps the
    # lane-width-4 path and the data-dependent gather out of the kernel).
    if not_to_xyxy:
        boxes_all = out_bbox.astype(jnp.float32)
    else:
        bb = out_bbox.astype(jnp.float32)
        cxcy, wh = bb[..., 0:2], bb[..., 2:4]
        boxes_all = jnp.concatenate([cxcy - 0.5 * wh, cxcy + 0.5 * wh], axis=-1)
    boxes = jnp.take_along_axis(boxes_all, topk_boxes[..., None], axis=1)

    img_h = target_sizes[:, 0].astype(jnp.float32)
    img_w = target_sizes[:, 1].astype(jnp.float32)
    scale_fct = jnp.stack([img_w, img_h, img_w, img_h], axis=1)        # [B, 4]
    boxes = boxes * scale_fct[:, None, :]

    results = [{"scores": scores[b], "labels": labels[b], "boxes": boxes[b]}
               for b in range(B)]
    return results, prob_padded[:, :, :L]


# --------------------------------- Main ------------------------------------- #

if __name__ == "__main__":
    positive_map, pos_map_t_padded = build_positive_map_padded()
    base_key = jax.random.PRNGKey(0)

    def run_case(case_idx, B, Q, num_select):
        k1, k2 = jax.random.split(jax.random.fold_in(base_key, case_idx))
        T = MAX_TEXT_LEN

        # Native model dtypes: bf16 logits (kernel casts internally), f32 boxes.
        pred_logits = jax.random.normal(k1, (B, Q, T), dtype=jnp.float32
                                        ).astype(jnp.bfloat16)
        pred_boxes = jax.random.uniform(k2, (B, Q, 4), dtype=jnp.float32,
                                        minval=0.05, maxval=0.45)      # cxcywh
        target_sizes = jnp.array([[480.0, 640.0], [320.0, 512.0]],
                                 dtype=jnp.float32)[:B]                # (h, w)

        outputs = {"pred_logits": pred_logits, "pred_boxes": pred_boxes}
        results, prob = postprocess_coco_grounding(
            outputs, target_sizes, pos_map_t_padded, num_select=num_select)
        jax.block_until_ready((prob, results[0]["scores"], results[0]["boxes"]))

        # ---- Correctness: kernel hot path vs pure-JAX reference
        # (same bf16 MXU operands, f32 accumulation).
        p_ref = jax.nn.sigmoid(pred_logits.astype(jnp.float32)).astype(jnp.bfloat16)
        prob_ref = jnp.dot(p_ref.reshape(B * Q, T), pos_map_t_padded,
                           preferred_element_type=jnp.float32
                           ).reshape(B, Q, LABEL_PAD)[:, :, :NUM_COCO_IDS]
        np.testing.assert_allclose(np.asarray(prob), np.asarray(prob_ref),
                                   rtol=1e-5, atol=1e-5)

        # Loose sanity vs full-f32 math (bound on bf16 MXU rounding).
        prob_f32 = jax.nn.sigmoid(pred_logits.astype(jnp.float32)) @ positive_map.T
        np.testing.assert_allclose(np.asarray(prob), np.asarray(prob_f32),
                                   atol=2e-2)

        # ---- Correctness: top_k / label decode / gather / scale vs the torch
        # formulation (91-wide flatten), built from the kernel's own prob.
        flat_ref = prob.reshape(B, Q * NUM_COCO_IDS)
        tv, ti = jax.lax.top_k(flat_ref, num_select)
        tb = ti // NUM_COCO_IDS
        lb = ti % NUM_COCO_IDS
        cxcy, wh = pred_boxes[..., 0:2], pred_boxes[..., 2:4]
        xyxy = jnp.concatenate([cxcy - 0.5 * wh, cxcy + 0.5 * wh], axis=-1)
        gboxes = jnp.take_along_axis(xyxy, tb[..., None], axis=1)
        img_h, img_w = target_sizes[:, 0], target_sizes[:, 1]
        sc = jnp.stack([img_w, img_h, img_w, img_h], axis=1)
        gboxes = gboxes * sc[:, None, :]

        for b in range(B):
            np.testing.assert_allclose(np.asarray(results[b]["scores"]),
                                       np.asarray(tv[b]), rtol=1e-6, atol=1e-6)
            np.testing.assert_array_equal(np.asarray(results[b]["labels"]),
                                          np.asarray(lb[b]))
            np.testing.assert_allclose(np.asarray(results[b]["boxes"]),
                                       np.asarray(gboxes[b]), rtol=1e-6, atol=1e-5)
            assert int(np.max(np.asarray(results[b]["labels"]))) < NUM_COCO_IDS
            assert results[b]["scores"].shape == (num_select,)
            assert results[b]["labels"].shape == (num_select,)
            assert results[b]["boxes"].shape == (num_select, 4)

    # Case 0: small shapes — grid-less whole-array path (B*Q = 64 rows).
    run_case(0, B=2, Q=32, num_select=300)
    # Case 1: larger shapes — row-tiled parallel-grid path (B*Q = 1024 rows).
    run_case(1, B=2, Q=512, num_select=300)

    print("KERNEL_OK")
</pallas_src>

<mosaic_0001>
module attributes {stable_mosaic.version = 11 : i64} {
  func.func @_prob_kernel(%arg0: memref<64x256xbf16, #tpu.memory_space<vmem>>, %arg1: memref<256x128xbf16, #tpu.memory_space<vmem>>, %arg2: memref<64x128xf32, #tpu.memory_space<vmem>>) attributes {dimension_semantics = [], scalar_prefetch = 0 : i64, scratch_operands = 0 : i64, tpu.core_type = #tpu.core_type<tc>} {
    %c0 = arith.constant 0 : index
    %c0_0 = arith.constant 0 : index
    %0 = vector.load %arg0[%c0, %c0_0] : memref<64x256xbf16, #tpu.memory_space<vmem>>, vector<64x256xbf16>
    %1 = arith.extf %0 : vector<64x256xbf16> to vector<64x256xf32>
    %2 = arith.negf %1 : vector<64x256xf32>
    %3 = math.exp %2 : vector<64x256xf32>
    %cst = arith.constant 1.000000e+00 : f32
    %4 = vector.broadcast %cst : f32 to vector<64x256xf32>
    %5 = arith.addf %4, %3 : vector<64x256xf32>
    %6 = arith.divf %4, %5 : vector<64x256xf32>
    %7 = arith.truncf %6 : vector<64x256xf32> to vector<64x256xbf16>
    %c0_1 = arith.constant 0 : index
    %c0_2 = arith.constant 0 : index
    %8 = vector.load %arg1[%c0_1, %c0_2] : memref<256x128xbf16, #tpu.memory_space<vmem>>, vector<256x128xbf16>
    %cst_3 = arith.constant dense<0.000000e+00> : vector<64x128xf32>
    %9 = tpu.matmul %7, %8, %cst_3 {dimension_numbers = #tpu.dot_dimension_numbers<[1], [0], [0], [1], [0, 0, 1, 1], [], []>} : vector<64x256xbf16>, vector<256x128xbf16>, vector<64x128xf32> -> vector<64x128xf32>
    %10 = tpu.iota {dimensions = array<i32: 1>} : vector<64x128xi32>
    %c91_i32 = arith.constant 91 : i32
    %11 = vector.broadcast %c91_i32 : i32 to vector<64x128xi32>
    %12 = arith.cmpi slt, %10, %11 : vector<64x128xi32>
    %cst_4 = arith.constant -1.000000e+00 : f32
    %13 = vector.broadcast %cst_4 : f32 to vector<64x128xf32>
    %14 = arith.select %12, %9, %13 : vector<64x128xi1>, vector<64x128xf32>
    %c0_5 = arith.constant 0 : index
    %c0_6 = arith.constant 0 : index
    %15 = vector.load %arg2[%c0_5, %c0_6] : memref<64x128xf32, #tpu.memory_space<vmem>>, vector<64x128xf32>
    tpu.vector_store %arg2[%c0_5, %c0_6], %14 {strides = array<i32>} : memref<64x128xf32, #tpu.memory_space<vmem>>, vector<64x128xf32>,
    return
  }
}

</mosaic_0001>

<bundles_post_ra>
// kernel: tpu_custom_call.1
= control target key start
LH: loop header
LB: loop body
LE: loop exit
PB: predicated region body
PF: predicated region fallthrough
CT: control target
= control target key end

     0   :  { %7 = vsyncpa [#allocation3], 0  ;;  %s685_s0 = inlined_call_operand.hbm [shape: bf16[64,256], index: 0, kind: input, shape index: {}]   ;;  %s686_s1 = inlined_call_operand.hbm [shape: bf16[256,128], index: 1, kind: input, shape index: {}]   ;;  %s687_s2 = inlined_call_operand.hbm [shape: f32[64,128], index: 2, kind: output, shape index: {}]  }
   0x1   :  { %8 = vsyncpa [#allocation6], 0 }
   0x2   :  { %9 = vsyncpa [#allocation4], 0  ;;  %s640_s9 = smov [#allocation2]  }
   0x3   :  { %s15_s10 = sshll.u32 %s640_s9, 4  ;;  %s16_s10 = int_to_ptr.vmem [resolvable:$true] %s15_s10 }
   0x4   :  { %s582_s11 = scalar_lea.vmem %s16_s10, 1024  ;;  %p587_p1 = scmp.lt.s32.totalorder %s16_s10, %s16_s10 }
   0x5   :  { %p583_p0 = scmp.ne.s32.totalorder %s16_s10, %s582_s11  ;;  %p588_p2 = scmp.lt.s32.totalorder %s582_s11, %s582_s11 }
   0x7   :  { %p589_p3 = por %p588_p2, %p587_p1 }
   0x9   :  { %p590_p4 = pnand %p589_p3, %p583_p0 }
   0xb   :  { %593 = shalt.err (!%p590_p4)
}
   0xc   :  { %s641_s12 = smov 128   ;;  %s642_s13 = smov 8  }
   0xd   :  { %21 = dma.hbm_to_vmem [thread:$0]  %s685_s0, 1024, %s16_s10, [#allocation3], %s641_s12, %s641_s12, %s642_s13  }
   0xe   :  { %s643_s16 = smov [#allocation5]  }
   0xf   :  { %s27_s17 = sshll.u32 %s643_s16, 4  ;;  %s28_s17 = int_to_ptr.vmem [resolvable:$true] %s27_s17 }
  0x10   :  { %s602_s18 = scalar_lea.vmem %s28_s17, 2048  ;;  %p607_p6 = scmp.lt.s32.totalorder %s28_s17, %s28_s17 }
  0x11   :  { %p603_p5 = scmp.ne.s32.totalorder %s28_s17, %s602_s18  ;;  %p608_p7 = scmp.lt.s32.totalorder %s602_s18, %s602_s18 }
  0x13   :  { %p609_p8 = por %p608_p7, %p607_p6 }
  0x15   :  { %p610_p9 = pnand %p609_p8, %p603_p5 }
  0x17   :  { %613 = shalt.err (!%p610_p9)
}
  0x18   :  { %s644_s19 = smov 64   ;;  %s645_s20 = smov 4  }
  0x19   :  { %33 = dma.hbm_to_vmem [thread:$0]  %s686_s1, 2048, %s28_s17, [#allocation6], %s644_s19, %s644_s19, %s645_s20  }
  0x1a   :  { %634 = dma.done.wait [#allocation3], 1024  }
  0x1b   :  { %635 = vsyncadd [#allocation3], 4294966272 }
  0x1c   :  { %636 = dma.done.wait [#allocation6], 2048  }
  0x1d   :  { %637 = vsyncadd [#allocation6], 4294965248  ;;  %v494_v0 = vld [vmem:[#allocation5 + $0x78] sm:$0xff]   ;;  %v496_v2 = vld [vmem:[#allocation5 + $0x70] sm:$0xff]   ;;  %s646_s0 = smov [#allocation7]  }
  0x1e   :  { %v495_v1 = vld [vmem:[#allocation5 + $0x38] sm:$0xff]   ;;  %431 = vmatprep.subr.bf16.mxu0 %v494_v0  ;;  %471 = vmatprep.subr.bf16.mxu1 %v494_v0  ;;  %v497_v3 = vld [vmem:[#allocation5 + $0x30] sm:$0xff]   ;;  %v498_v4 = vld [vmem:[#allocation5 + $0x68] sm:$0xff]   ;;  %s386_s1 = sshll.u32 %s646_s0, 4  ;;  %s387_s1 = int_to_ptr.vmem [resolvable:$true] %s386_s1 }
  0x1f   :  { %432 = vmatpush3.bf16.msra.mxu0 %v495_v1  ;;  %479 = vmatpush3.bf16.msra.mxu1 %v495_v1  ;;  %v499_v5 = vld [vmem:[#allocation5 + $0x28] sm:$0xff]   ;;  %v500_v6 = vld [vmem:[#allocation5 + $0x60] sm:$0xff]   ;;  %v502_v8 = vld [vmem:[#allocation5 + $0x58] sm:$0xff]   ;;  %s614_s23 = scalar_lea.vmem %s387_s1, 1024  ;;  %p619_p11 = scmp.lt.s32.totalorder %s387_s1, %s387_s1 }
  0x20   :  { %433 = vmatprep.subr.bf16.mxu0 %v496_v2  ;;  %472 = vmatprep.subr.bf16.mxu1 %v496_v2  ;;  %v501_v7 = vld [vmem:[#allocation5 + $0x20] sm:$0xff]   ;;  %v503_v9 = vld [vmem:[#allocation5 + $0x18] sm:$0xff]   ;;  %v504_v10 = vld [vmem:[#allocation5 + $0x50] sm:$0xff]   ;;  %p615_p10 = scmp.ne.s32.totalorder %s387_s1, %s614_s23  ;;  %p620_p12 = scmp.lt.s32.totalorder %s614_s23, %s614_s23 }
  0x21   :  { %v41_v11 = vld [vmem:[#allocation2] sm:$0xff]  ;;  %v42_v12 = vld [vmem:[#allocation2 + $0x8] sm:$0xff]  ;;  %v43_v21 = vld [vmem:[#allocation2 + $0x10] sm:$0xff] }
  0x22   :  { %v45_v13 = vld [vmem:[#allocation2 + $0x20] sm:$0xff]  ;;  %v49_v14 = vunpack.c.l.bf16 %v41_v11  ;;  %v50_v15 = vunpack.c.h.bf16 %v41_v11  ;;  %v52_v16 = vunpack.c.h.bf16 %v42_v12  ;;  %v46_v17 = vld [vmem:[#allocation2 + $0x28] sm:$0xff]  ;;  %v51_v18 = vunpack.c.l.bf16 %v42_v12  ;;  %v505_v22 = vld [vmem:[#allocation5 + $0x10] sm:$0xff]   ;;  %p621_p13 = por %p620_p12, %p619_p11 }
  0x23   :  { %434 = vmatpush3.bf16.msra.mxu0 %v497_v3  ;;  %480 = vmatpush3.bf16.msra.mxu1 %v497_v3  ;;  %v58_v19 = vunpack.c.h.bf16 %v45_v13  ;;  %v60_v20 = vunpack.c.h.bf16 %v46_v17  ;;  %v57_v24 = vunpack.c.l.bf16 %v45_v13  ;;  %v44_v25 = vld [vmem:[#allocation2 + $0x18] sm:$0xff]  ;;  %v506_v26 = vld [vmem:[#allocation5 + $0x48] sm:$0xff]   ;;  %v59_v28 = vunpack.c.l.bf16 %v46_v17  ;;  %v47_v30 = vld [vmem:[#allocation2 + $0x30] sm:$0xff] }
  0x24   :  { %435 = vmatprep.subr.bf16.mxu0 %v498_v4  ;;  %473 = vmatprep.subr.bf16.mxu1 %v498_v4  ;;  %v400_v23 = vmul.f32 -1.442695, %v50_v15  ;;  %v402_v27 = vmul.f32 -1.442695, %v52_v16  ;;  %v399_v31 = vmul.f32 -1.442695, %v49_v14  ;;  %v54_v33 = vunpack.c.h.bf16 %v43_v21  ;;  %p622_p0 = pnand %p621_p13, %p615_p10 }
  0x25   :  { %v408_v29 = vmul.f32 -1.442695, %v58_v19  ;;  %v410_v32 = vmul.f32 -1.442695, %v60_v20  ;;  %v48_v34 = vld [vmem:[#allocation2 + $0x38] sm:$0xff]  ;;  %v56_v36 = vunpack.c.h.bf16 %v44_v25  ;;  %v507_v37 = vld [vmem:[#allocation5 + $0x8] sm:$0xff]   ;;  %v62_v39 = vunpack.c.h.bf16 %v47_v30 }
  0x26   :  { %510 = vpow2.f32 %v400_v23  ;;  %v401_v35 = vmul.f32 -1.442695, %v51_v18  ;;  %v407_v38 = vmul.f32 -1.442695, %v57_v24  ;;  %v508_v40 = vld [vmem:[#allocation5 + $0x40] sm:$0xff]   ;;  %v64_v42 = vunpack.c.h.bf16 %v48_v34 }
  0x27   :  { %436 = vmatpush3.bf16.msra.mxu0 %v499_v5  ;;  %481 = vmatpush3.bf16.msra.mxu1 %v499_v5  ;;  %512 = vpow2.f32 %v402_v27  ;;  %v409_v41 = vmul.f32 -1.442695, %v59_v28  ;;  %v404_v43 = vmul.f32 -1.442695, %v54_v33  ;;  %v53_v44 = vunpack.c.l.bf16 %v43_v21  ;;  %v509_v47 = vld [vmem:[#allocation5] sm:$0xff]  }
  0x28   :  { %437 = vmatprep.subr.bf16.mxu0 %v500_v6  ;;  %474 = vmatprep.subr.bf16.mxu1 %v500_v6  ;;  %514 = vpow2.f32 %v408_v29  ;;  %v406_v45 = vmul.f32 -1.442695, %v56_v36  ;;  %v55_v46 = vunpack.c.l.bf16 %v44_v25  ;;  %v412_v48 = vmul.f32 -1.442695, %v62_v39 }
  0x29   :  { %516 = vpow2.f32 %v410_v32  ;;  %v61_v49 = vunpack.c.l.bf16 %v47_v30  ;;  %v414_v50 = vmul.f32 -1.442695, %v64_v42  ;;  %v63_v51 = vunpack.c.l.bf16 %v48_v34 }
  0x2a   :  { %518 = vpow2.f32 %v399_v31  ;;  %v403_v52 = vmul.f32 -1.442695, %v53_v44  ;;  %v405_v53 = vmul.f32 -1.442695, %v55_v46 }
  0x2b   :  { %438 = vmatpush3.bf16.msra.mxu0 %v501_v7  ;;  %482 = vmatpush3.bf16.msra.mxu1 %v501_v7  ;;  %520 = vpow2.f32 %v401_v35  ;;  %v411_v54 = vmul.f32 -1.442695, %v61_v49  ;;  %v413_v55 = vmul.f32 -1.442695, %v63_v51 }
  0x2c   :  { %439 = vmatprep.subr.bf16.mxu0 %v502_v8  ;;  %475 = vmatprep.subr.bf16.mxu1 %v502_v8  ;;  %522 = vpow2.f32 %v407_v38 }
  0x2d   :  { %524 = vpow2.f32 %v409_v41 }
  0x2e   :  { %526 = vpow2.f32 %v404_v43 }
  0x2f   :  { %440 = vmatpush3.bf16.msra.mxu0 %v503_v9  ;;  %483 = vmatpush3.bf16.msra.mxu1 %v503_v9  ;;  %528 = vpow2.f32 %v406_v45 }
  0x30   :  { %441 = vmatprep.subr.bf16.mxu0 %v504_v10  ;;  %476 = vmatprep.subr.bf16.mxu1 %v504_v10  ;;  %530 = vpow2.f32 %v412_v48  ;;  %v362_v48 = vlaneseq }
  0x31   :  { %532 = vpow2.f32 %v414_v50 }
  0x32   :  { %534 = vpow2.f32 %v403_v52  ;;  %v363_v49 = vand.u32 127, %v362_v48 }
  0x33   :  { %442 = vmatpush3.bf16.msra.mxu0 %v505_v22  ;;  %484 = vmatpush3.bf16.msra.mxu1 %v505_v22  ;;  %v511_v56 = vpop.eup %510  ;;  %536 = vpow2.f32 %v405_v53 }
  0x34   :  { %443 = vmatprep.subr.bf16.mxu0 %v506_v26  ;;  %477 = vmatprep.subr.bf16.mxu1 %v506_v26  ;;  %v513_v57 = vpop.eup %512  ;;  %v114_v58 = vadd.f32 1.0, %v511_v56  ;;  %538 = vpow2.f32 %v411_v54  ;;  %vm364_vm0 = vcmp.lt.s32.totalorder %v363_v49, 91 }
  0x35   :  { %v515_v59 = vpop.eup %514  ;;  %v116_v60 = vadd.f32 1.0, %v513_v57  ;;  %540 = vpow2.f32 %v413_v55 }
  0x36   :  { %v517_v61 = vpop.eup %516  ;;  %542 = vrcp.f32 %v114_v58  ;;  %v122_v62 = vadd.f32 1.0, %v515_v59 }
  0x37   :  { %444 = vmatpush3.bf16.msra.mxu0 %v507_v37  ;;  %485 = vmatpush3.bf16.msra.mxu1 %v507_v37  ;;  %v519_v63 = vpop.eup %518  ;;  %544 = vrcp.f32 %v116_v60  ;;  %v124_v0 = vadd.f32 1.0, %v517_v61 }
  0x38   :  { %445 = vmatprep.subr.bf16.mxu0 %v508_v40  ;;  %478 = vmatprep.subr.bf16.mxu1 %v508_v40  ;;  %v521_v1 = vpop.eup %520  ;;  %546 = vrcp.f32 %v122_v62  ;;  %v113_v2 = vadd.f32 1.0, %v519_v63 }
  0x39   :  { %v523_v3 = vpop.eup %522  ;;  %548 = vrcp.f32 %v124_v0  ;;  %v115_v4 = vadd.f32 1.0, %v521_v1 }
  0x3a   :  { %v525_v5 = vpop.eup %524  ;;  %550 = vrcp.f32 %v113_v2  ;;  %v121_v6 = vadd.f32 1.0, %v523_v3 }
  0x3b   :  { %446 = vmatpush3.bf16.msra.mxu0 %v509_v47  ;;  %486 = vmatpush3.bf16.msra.mxu1 %v509_v47  ;;  %v527_v7 = vpop.eup %526  ;;  %552 = vrcp.f32 %v115_v4  ;;  %v123_v8 = vadd.f32 1.0, %v525_v5 }
  0x3c   :  { %v529_v9 = vpop.eup %528  ;;  %554 = vrcp.f32 %v121_v6  ;;  %v118_v10 = vadd.f32 1.0, %v527_v7 }
  0x3d   :  { %v531_v11 = vpop.eup %530  ;;  %556 = vrcp.f32 %v123_v8  ;;  %v120_v12 = vadd.f32 1.0, %v529_v9 }
  0x3e   :  { %v533_v13 = vpop.eup %532  ;;  %558 = vrcp.f32 %v118_v10  ;;  %v126_v14 = vadd.f32 1.0, %v531_v11 }
  0x3f   :  { %v535_v15 = vpop.eup %534  ;;  %560 = vrcp.f32 %v120_v12  ;;  %v128_v16 = vadd.f32 1.0, %v533_v13 }
  0x40   :  { %v537_v17 = vpop.eup %536  ;;  %562 = vrcp.f32 %v126_v14  ;;  %v117_v18 = vadd.f32 1.0, %v535_v15 }
  0x41   :  { %v539_v19 = vpop.eup %538  ;;  %564 = vrcp.f32 %v128_v16  ;;  %v119_v20 = vadd.f32 1.0, %v537_v17 }
  0x42   :  { %v541_v21 = vpop.eup %540  ;;  %566 = vrcp.f32 %v117_v18  ;;  %v125_v22 = vadd.f32 1.0, %v539_v19 }
  0x43   :  { %v543_v23 = vpop.eup %542  ;;  %568 = vrcp.f32 %v119_v20  ;;  %v127_v24 = vadd.f32 1.0, %v541_v21 }
  0x44   :  { %v545_v25 = vpop.eup %544  ;;  %570 = vrcp.f32 %v125_v22 }
  0x45   :  { %v547_v26 = vpop.eup %546  ;;  %v162_v27 = vpack.c.bf16 %v545_v25, %v543_v23  ;;  %572 = vrcp.f32 %v127_v24 }
  0x46   :  { %v549_v28 = vpop.eup %548 }
  0x47   :  { %v551_v29 = vpop.eup %550  ;;  %329 = vmatprep.mubr.bf16.mxu0 %v162_v27  ;;  %v166_v30 = vpack.c.bf16 %v549_v28, %v547_v26 }
  0x48   :  { %v553_v31 = vpop.eup %552 }
  0x49   :  { %v555_v32 = vpop.eup %554  ;;  %345 = vmatprep.mubr.bf16.mxu1 %v166_v30  ;;  %v161_v33 = vpack.c.bf16 %v553_v31, %v551_v29 }
  0x4a   :  { %v557_v34 = vpop.eup %556 }
  0x4b   :  { %v559_v35 = vpop.eup %558  ;;  %330 = vmatmul.mubr.bf16.vlgmr.msra.gmra.mxu0 %v161_v33  ;;  %v165_v36 = vpack.c.bf16 %v557_v34, %v555_v32 }
  0x4c   :  { %v561_v37 = vpop.eup %560 }
  0x4d   :  { %v563_v38 = vpop.eup %562  ;;  %346 = vmatmul.mubr.bf16.vlgmr.msra.gmra.mxu1 %v165_v36  ;;  %v164_v39 = vpack.c.bf16 %v561_v37, %v559_v35 }
  0x4e   :  { %v565_v40 = vpop.eup %564 }
  0x4f   :  { %v567_v41 = vpop.eup %566  ;;  %337 = vmatprep.mubr.bf16.mxu0 %v164_v39  ;;  %v168_v42 = vpack.c.bf16 %v565_v40, %v563_v38 }
  0x50   :  { %v569_v43 = vpop.eup %568 }
  0x51   :  { %v571_v44 = vpop.eup %570  ;;  %353 = vmatprep.mubr.bf16.mxu1 %v168_v42  ;;  %v163_v45 = vpack.c.bf16 %v569_v43, %v567_v41 }
  0x52   :  { %v573_v46 = vpop.eup %572 }
  0x53   :  { %338 = vmatmul.mubr.bf16.gmra.mxu0 %v163_v45  ;;  %v167_v47 = vpack.c.bf16 %v573_v46, %v571_v44 }
  0x55   :  { %354 = vmatmul.mubr.bf16.gmra.mxu1 %v167_v47 }
 0x10b   :  { %v447_v50 = vpop.f32.mrf.mxu0 }
 0x10d   :  { %v459_v51 = vpop.f32.mrf.mxu1  ;;  %v448_v52 = vpop.f32.mrf.mxu0 }
 0x10e   :  { %v449_v53 = vadd.f32 %v448_v52, %v447_v50 }
 0x10f   :  { %v460_v54 = vpop.f32.mrf.mxu1  ;;  %v450_v55 = vpop.f32.mrf.mxu0 }
 0x110   :  { %v365_v56 = vsel %vm364_vm0, %v449_v53, -1.0  ;;  %v461_v57 = vadd.f32 %v460_v54, %v459_v51 }
 0x111   :  { %373 = vst [vmem:[#allocation7] sm:$0xff] %v365_v56  ;;  %v462_v58 = vpop.f32.mrf.mxu1  ;;  %v451_v59 = vpop.f32.mrf.mxu0 }
 0x112   :  { %v369_v60 = vsel %vm364_vm0, %v461_v57, -1.0  ;;  %v452_v61 = vadd.f32 %v451_v59, %v450_v55 }
 0x113   :  { %377 = vst [vmem:[#allocation7 + $0x20] sm:$0xff] %v369_v60  ;;  %v463_v62 = vpop.f32.mrf.mxu1  ;;  %v453_v63 = vpop.f32.mrf.mxu0 }
 0x114   :  { %v366_v0 = vsel %vm364_vm0, %v452_v61, -1.0  ;;  %v464_v1 = vadd.f32 %v463_v62, %v462_v58 }
 0x115   :  { %374 = vst [vmem:[#allocation7 + $0x8] sm:$0xff] %v366_v0  ;;  %v465_v2 = vpop.f32.mrf.mxu1  ;;  %v454_v3 = vpop.f32.mrf.mxu0 }
 0x116   :  { %v370_v4 = vsel %vm364_vm0, %v464_v1, -1.0  ;;  %v455_v5 = vadd.f32 %v454_v3, %v453_v63 }
 0x117   :  { %378 = vst [vmem:[#allocation7 + $0x28] sm:$0xff] %v370_v4  ;;  %v466_v6 = vpop.f32.mrf.mxu1  ;;  %v456_v7 = vpop.f32.mrf.mxu0 }
 0x118   :  { %v367_v8 = vsel %vm364_vm0, %v455_v5, -1.0  ;;  %v467_v9 = vadd.f32 %v466_v6, %v465_v2 }
 0x119   :  { %375 = vst [vmem:[#allocation7 + $0x10] sm:$0xff] %v367_v8  ;;  %v468_v10 = vpop.f32.mrf.mxu1  ;;  %v457_v11 = vpop.f32.mrf.mxu0 }
 0x11a   :  { %v371_v12 = vsel %vm364_vm0, %v467_v9, -1.0  ;;  %v458_v13 = vadd.f32 %v457_v11, %v456_v7 }
 0x11b   :  { %379 = vst [vmem:[#allocation7 + $0x30] sm:$0xff] %v371_v12  ;;  %v469_v14 = vpop.f32.mrf.mxu1 }
 0x11c   :  { %v368_v15 = vsel %vm364_vm0, %v458_v13, -1.0  ;;  %v470_v16 = vadd.f32 %v469_v14, %v468_v10 }
 0x11d   :  { %376 = vst [vmem:[#allocation7 + $0x18] sm:$0xff] %v368_v15 }
 0x11e   :  { %v372_v17 = vsel %vm364_vm0, %v470_v16, -1.0 }
 0x11f   :  { %380 = vst [vmem:[#allocation7 + $0x38] sm:$0xff] %v372_v17 }
 0x120   :  { %625 = shalt.err (!%p622_p0)
}
 0x121   :  { %392 = dma.vmem_to_hbm [thread:$0]  %s387_s1, 1024, %s687_s2, [#allocation4], %s641_s12, %s641_s12, %s642_s13  }
 0x122   :  { %638 = dma.done.wait [#allocation4], 1024  }
 0x123   :  { %639 = vsyncadd [#allocation4], 4294966272 }
 0x124   :  { %396 = vsyncpa [#allocation3], 1 }
 0x125   :  { %397 = vsyncpa [#allocation6], 1 }
 0x126   :  { %398 = vsyncpa [#allocation4], 1 }

</bundles_post_ra>
